<compile_context>
chip_gen: v7x
topology: tpu7x:2x2x1
jax: 0.10.0
libtpu: 0.0.40
codegen_flags: <defaults>
</compile_context>

<pallas_src>
import functools

import jax
import jax.numpy as jnp
from jax.experimental import pallas as pl
from jax.experimental.pallas import tpu as pltpu

HIDDEN = 100
LANE = 128
SUBLANE = 8
# Memory/overhead-bound kernel: big batch tiles amortize the ~0.35 us/step pipeline
# overhead. At TB=2048 the per-step VMEM footprint (x/out tiles + resident weights +
# f32 intermediates) is a few MiB, comfortably under every generation's scoped default.
MAX_BLOCK_B = 2048


def _round_up(n, m):
    return (n + m - 1) // m * m


def _mlp_kernel(x_ref, w1_ref, b1_ref, w2_ref, b2_ref, w3_ref, b3_ref, o_ref):
    # x_ref: (TB, in_dim) f32 (unpadded feature dim); weights bf16; biases f32;
    # o_ref: (TB, out_dim) f32 (unpadded feature dim).
    x = x_ref[...].astype(jnp.bfloat16)

    h1 = jnp.dot(x, w1_ref[...], preferred_element_type=jnp.float32) + b1_ref[...]
    h1 = jnp.maximum(h1, 0.0).astype(jnp.bfloat16)

    h2 = jnp.dot(h1, w2_ref[...], preferred_element_type=jnp.float32) + b2_ref[...]
    h2 = jnp.maximum(h2, 0.0).astype(jnp.bfloat16)

    out = jnp.dot(h2, w3_ref[...], preferred_element_type=jnp.float32) + b3_ref[...]
    o_ref[...] = out  # already f32; no cast needed


def prepare_params(params):
    """One-time pad (hidden dim -> 128 lanes) + bf16 cast of the weights.

    Hoisted out of the forward so the per-call wrapper does no weight prep.
    Zero padding is a numerical no-op through matmul + bias + ReLU.
    Weights are (in_features, out_features): kernel computes x @ W + b,
    matching PyTorch's x @ W.T + b.
    """
    w1, b1 = params["w1"], params["b1"]
    w2, b2 = params["w2"], params["b2"]
    w3, b3 = params["w3"], params["b3"]

    hid = w1.shape[1]
    hid_p = _round_up(hid, LANE)
    dh = hid_p - hid

    return {
        # (in_dim, hid_p): input features stay unpadded, hidden padded to 128 lanes.
        "w1": jnp.pad(w1, ((0, 0), (0, dh))).astype(jnp.bfloat16),
        "b1": jnp.pad(b1, ((0, 0), (0, dh))).astype(jnp.float32),
        "w2": jnp.pad(w2, ((0, dh), (0, dh))).astype(jnp.bfloat16),
        "b2": jnp.pad(b2, ((0, 0), (0, dh))).astype(jnp.float32),
        # (hid_p, out_dim): output features stay unpadded (lean writeback).
        "w3": jnp.pad(w3, ((0, dh), (0, 0))).astype(jnp.bfloat16),
        "b3": b3.astype(jnp.float32),
    }


@functools.partial(jax.jit, static_argnames=("block_b",))
def network_forward(x, prepared, *, block_b=MAX_BLOCK_B):
    """x: (B, input_dim) float32. prepared: output of prepare_params (padded/cast)."""
    w1, b1 = prepared["w1"], prepared["b1"]
    w2, b2 = prepared["w2"], prepared["b2"]
    w3, b3 = prepared["w3"], prepared["b3"]

    B, in_dim = x.shape
    hid_p = w1.shape[1]
    out_dim = w3.shape[1]

    # Batch tile: as large as MAX_BLOCK_B, but keep >= 2 grid steps when the batch
    # allows it so the "parallel" grid axis can use both v7x TensorCores.
    b8 = _round_up(B, SUBLANE)
    half = _round_up(-(-b8 // 2), SUBLANE)
    tb = max(SUBLANE, min(block_b, half))
    b_p = _round_up(B, tb)
    grid = (b_p // tb,)

    xp = x if b_p == B else jnp.pad(x, ((0, b_p - B), (0, 0)))

    out_full = pl.pallas_call(
        _mlp_kernel,
        out_shape=jax.ShapeDtypeStruct((b_p, out_dim), jnp.float32),
        grid_spec=pltpu.PrefetchScalarGridSpec(
            num_scalar_prefetch=0,
            grid=grid,
            in_specs=[
                # x: batch-tiled, feature dim is the full array dim (no lane padding).
                pl.BlockSpec((tb, in_dim), lambda i: (i, 0)),
                # Weights/biases: grid-invariant (VMEM-resident across steps).
                pl.BlockSpec((in_dim, hid_p), lambda i: (0, 0)),   # w1
                pl.BlockSpec((1, hid_p), lambda i: (0, 0)),        # b1
                pl.BlockSpec((hid_p, hid_p), lambda i: (0, 0)),    # w2
                pl.BlockSpec((1, hid_p), lambda i: (0, 0)),        # b2
                pl.BlockSpec((hid_p, out_dim), lambda i: (0, 0)),  # w3
                pl.BlockSpec((1, out_dim), lambda i: (0, 0)),      # b3
            ],
            # Output: batch-tiled, real out_dim (full array dim) -> minimal writeback.
            out_specs=pl.BlockSpec((tb, out_dim), lambda i: (i, 0)),
        ),
        compiler_params=pltpu.CompilerParams(
            dimension_semantics=("parallel",),  # shard batch steps across TCs (v7x)
        ),
    )(xp, w1, b1, w2, b2, w3, b3)

    return out_full if b_p == B else out_full[:B]


def init_params(key, input_dim, output_dim):
    """Deterministic synthetic init (PyTorch-style uniform fan-in bounds)."""
    ks = jax.random.split(key, 6)

    def linear(kw, kb, fan_in, fan_out):
        bound = 1.0 / jnp.sqrt(fan_in)
        w = jax.random.uniform(kw, (fan_in, fan_out), jnp.float32, -bound, bound)
        b = jax.random.uniform(kb, (1, fan_out), jnp.float32, -bound, bound)
        return w, b

    w1, b1 = linear(ks[0], ks[1], input_dim, HIDDEN)
    w2, b2 = linear(ks[2], ks[3], HIDDEN, HIDDEN)
    w3, b3 = linear(ks[4], ks[5], HIDDEN, output_dim)
    return {"w1": w1, "b1": b1, "w2": w2, "b2": b2, "w3": w3, "b3": b3}


def _reference_forward_f32(x, p):
    h1 = jnp.maximum(x @ p["w1"] + p["b1"], 0.0)
    h2 = jnp.maximum(h1 @ p["w2"] + p["b2"], 0.0)
    return h2 @ p["w3"] + p["b3"]


def _reference_forward_bf16(x, p):
    # Mirrors the kernel's precision: bf16 MXU inputs, f32 accumulation.
    bf = jnp.bfloat16
    h1 = jnp.dot(x.astype(bf), p["w1"].astype(bf),
                 preferred_element_type=jnp.float32) + p["b1"]
    h1 = jnp.maximum(h1, 0.0).astype(bf)
    h2 = jnp.dot(h1, p["w2"].astype(bf),
                 preferred_element_type=jnp.float32) + p["b2"]
    h2 = jnp.maximum(h2, 0.0).astype(bf)
    return jnp.dot(h2, p["w3"].astype(bf),
                   preferred_element_type=jnp.float32) + p["b3"]


if __name__ == "__main__":
    key = jax.random.PRNGKey(0)
    k_x, k_p = jax.random.split(key)

    batch = 50        # non-multiple of the tile -> exercises batch padding + 2 grid steps
    input_dim = 4     # small RL state vector
    output_dim = 2    # small action-value head

    x = jax.random.normal(k_x, (batch, input_dim), dtype=jnp.float32)
    params = init_params(k_p, input_dim, output_dim)
    prepared = prepare_params(params)   # one-time weight prep (hoisted out of forward)

    out = network_forward(x, prepared)
    out = jax.block_until_ready(out)
    assert out.shape == (batch, output_dim)

    ref_bf16 = _reference_forward_bf16(x, params)
    ref_f32 = _reference_forward_f32(x, params)
    assert jnp.allclose(out, ref_bf16, atol=1e-3, rtol=1e-3), "mismatch vs bf16 reference"
    assert jnp.allclose(out, ref_f32, atol=5e-2, rtol=5e-2), "mismatch vs f32 reference"

    print("KERNEL_OK")
</pallas_src>

<mosaic_0001>
module attributes {stable_mosaic.version = 11 : i64} {
  func.func @_mlp_kernel(%arg0: i32, %arg1: memref<32x4xf32, #tpu.memory_space<vmem>>, %arg2: memref<4x128xbf16, #tpu.memory_space<vmem>>, %arg3: memref<1x128xf32, #tpu.memory_space<vmem>>, %arg4: memref<128x128xbf16, #tpu.memory_space<vmem>>, %arg5: memref<1x128xf32, #tpu.memory_space<vmem>>, %arg6: memref<128x2xbf16, #tpu.memory_space<vmem>>, %arg7: memref<1x2xf32, #tpu.memory_space<vmem>>, %arg8: memref<32x2xf32, #tpu.memory_space<vmem>>) attributes {dimension_semantics = [#tpu.dimension_semantics<parallel>], iteration_bounds = array<i64: 2>, scalar_prefetch = 0 : i64, scratch_operands = 0 : i64, tpu.core_type = #tpu.core_type<tc>, window_params = [{transform_indices = @transform_0, window_bounds = array<i64: 32, 4>}, {pipeline_mode = #tpu.pipeline_mode<synchronous>, transform_indices = @transform_1, window_bounds = array<i64: 4, 128>}, {pipeline_mode = #tpu.pipeline_mode<synchronous>, transform_indices = @transform_2, window_bounds = array<i64: 1, 128>}, {pipeline_mode = #tpu.pipeline_mode<synchronous>, transform_indices = @transform_3, window_bounds = array<i64: 128, 128>}, {pipeline_mode = #tpu.pipeline_mode<synchronous>, transform_indices = @transform_4, window_bounds = array<i64: 1, 128>}, {pipeline_mode = #tpu.pipeline_mode<synchronous>, transform_indices = @transform_5, window_bounds = array<i64: 128, 2>}, {pipeline_mode = #tpu.pipeline_mode<synchronous>, transform_indices = @transform_6, window_bounds = array<i64: 1, 2>}, {transform_indices = @transform_7, window_bounds = array<i64: 32, 2>}]} {
    %c0 = arith.constant 0 : index
    %c0_0 = arith.constant 0 : index
    %0 = vector.load %arg1[%c0, %c0_0] : memref<32x4xf32, #tpu.memory_space<vmem>>, vector<32x4xf32>
    %1 = arith.truncf %0 : vector<32x4xf32> to vector<32x4xbf16>
    %c0_1 = arith.constant 0 : index
    %c0_2 = arith.constant 0 : index
    %2 = vector.load %arg2[%c0_1, %c0_2] : memref<4x128xbf16, #tpu.memory_space<vmem>>, vector<4x128xbf16>
    %cst = arith.constant dense<0.000000e+00> : vector<32x128xf32>
    %3 = tpu.matmul %1, %2, %cst {dimension_numbers = #tpu.dot_dimension_numbers<[1], [0], [0], [1], [0, 0, 1, 1], [], []>} : vector<32x4xbf16>, vector<4x128xbf16>, vector<32x128xf32> -> vector<32x128xf32>
    %c0_3 = arith.constant 0 : index
    %c0_4 = arith.constant 0 : index
    %4 = vector.load %arg3[%c0_3, %c0_4] : memref<1x128xf32, #tpu.memory_space<vmem>>, vector<1x128xf32>
    %5 = vector.broadcast %4 : vector<1x128xf32> to vector<32x128xf32>
    %6 = arith.addf %3, %5 : vector<32x128xf32>
    %cst_5 = arith.constant 0.000000e+00 : f32
    %7 = vector.broadcast %cst_5 : f32 to vector<32x128xf32>
    %8 = arith.maximumf %6, %7 : vector<32x128xf32>
    %9 = arith.truncf %8 : vector<32x128xf32> to vector<32x128xbf16>
    %c0_6 = arith.constant 0 : index
    %c0_7 = arith.constant 0 : index
    %10 = vector.load %arg4[%c0_6, %c0_7] : memref<128x128xbf16, #tpu.memory_space<vmem>>, vector<128x128xbf16>
    %cst_8 = arith.constant dense<0.000000e+00> : vector<32x128xf32>
    %11 = tpu.matmul %9, %10, %cst_8 {dimension_numbers = #tpu.dot_dimension_numbers<[1], [0], [0], [1], [0, 0, 1, 1], [], []>} : vector<32x128xbf16>, vector<128x128xbf16>, vector<32x128xf32> -> vector<32x128xf32>
    %c0_9 = arith.constant 0 : index
    %c0_10 = arith.constant 0 : index
    %12 = vector.load %arg5[%c0_9, %c0_10] : memref<1x128xf32, #tpu.memory_space<vmem>>, vector<1x128xf32>
    %13 = vector.broadcast %12 : vector<1x128xf32> to vector<32x128xf32>
    %14 = arith.addf %11, %13 : vector<32x128xf32>
    %cst_11 = arith.constant 0.000000e+00 : f32
    %15 = vector.broadcast %cst_11 : f32 to vector<32x128xf32>
    %16 = arith.maximumf %14, %15 : vector<32x128xf32>
    %17 = arith.truncf %16 : vector<32x128xf32> to vector<32x128xbf16>
    %c0_12 = arith.constant 0 : index
    %c0_13 = arith.constant 0 : index
    %18 = vector.load %arg6[%c0_12, %c0_13] : memref<128x2xbf16, #tpu.memory_space<vmem>>, vector<128x2xbf16>
    %cst_14 = arith.constant dense<0.000000e+00> : vector<32x2xf32>
    %19 = tpu.matmul %17, %18, %cst_14 {dimension_numbers = #tpu.dot_dimension_numbers<[1], [0], [0], [1], [0, 0, 1, 1], [], []>} : vector<32x128xbf16>, vector<128x2xbf16>, vector<32x2xf32> -> vector<32x2xf32>
    %c0_15 = arith.constant 0 : index
    %c0_16 = arith.constant 0 : index
    %20 = vector.load %arg7[%c0_15, %c0_16] : memref<1x2xf32, #tpu.memory_space<vmem>>, vector<1x2xf32>
    %21 = vector.broadcast %20 : vector<1x2xf32> to vector<32x2xf32>
    %22 = arith.addf %19, %21 : vector<32x2xf32>
    %c0_17 = arith.constant 0 : index
    %c0_18 = arith.constant 0 : index
    %23 = vector.load %arg8[%c0_17, %c0_18] : memref<32x2xf32, #tpu.memory_space<vmem>>, vector<32x2xf32>
    tpu.vector_store %arg8[%c0_17, %c0_18], %22 {strides = array<i32>} : memref<32x2xf32, #tpu.memory_space<vmem>>, vector<32x2xf32>,
    return
  }
  func.func @transform_0(%arg0: i32) -> (i32, i32) {
    %c0_i32 = arith.constant 0 : i32
    %c0_i32_0 = arith.constant 0 : i32
    return %arg0, %c0_i32 : i32, i32
  }
  func.func @transform_1(%arg0: i32) -> (i32, i32) {
    %c0_i32 = arith.constant 0 : i32
    %c0_i32_0 = arith.constant 0 : i32
    %c0_i32_1 = arith.constant 0 : i32
    return %c0_i32, %c0_i32_0 : i32, i32
  }
  func.func @transform_2(%arg0: i32) -> (i32, i32) {
    %c0_i32 = arith.constant 0 : i32
    %c0_i32_0 = arith.constant 0 : i32
    %c0_i32_1 = arith.constant 0 : i32
    return %c0_i32, %c0_i32_0 : i32, i32
  }
  func.func @transform_3(%arg0: i32) -> (i32, i32) {
    %c0_i32 = arith.constant 0 : i32
    %c0_i32_0 = arith.constant 0 : i32
    %c0_i32_1 = arith.constant 0 : i32
    return %c0_i32, %c0_i32_0 : i32, i32
  }
  func.func @transform_4(%arg0: i32) -> (i32, i32) {
    %c0_i32 = arith.constant 0 : i32
    %c0_i32_0 = arith.constant 0 : i32
    %c0_i32_1 = arith.constant 0 : i32
    return %c0_i32, %c0_i32_0 : i32, i32
  }
  func.func @transform_5(%arg0: i32) -> (i32, i32) {
    %c0_i32 = arith.constant 0 : i32
    %c0_i32_0 = arith.constant 0 : i32
    %c0_i32_1 = arith.constant 0 : i32
    return %c0_i32, %c0_i32_0 : i32, i32
  }
  func.func @transform_6(%arg0: i32) -> (i32, i32) {
    %c0_i32 = arith.constant 0 : i32
    %c0_i32_0 = arith.constant 0 : i32
    %c0_i32_1 = arith.constant 0 : i32
    return %c0_i32, %c0_i32_0 : i32, i32
  }
  func.func @transform_7(%arg0: i32) -> (i32, i32) {
    %c0_i32 = arith.constant 0 : i32
    %c0_i32_0 = arith.constant 0 : i32
    return %arg0, %c0_i32 : i32, i32
  }
}

</mosaic_0001>

<bundles_post_ra>
// kernel: network_forward.1
= control target key start
LH: loop header
LB: loop body
LE: loop exit
PB: predicated region body
PF: predicated region fallthrough
CT: control target
= control target key end

     0   :  { %s844_s24 = smov 0   ;;  %s928_s0 = inlined_call_operand.vmem [shape: f32[64,4], index: 0, kind: input, shape index: {}]   ;;  %s929_s1 = inlined_call_operand.vmem [shape: bf16[4,128], index: 1, kind: input, shape index: {}]   ;;  %s930_s2 = inlined_call_operand.vmem [shape: f32[1,128], index: 2, kind: input, shape index: {}]   ;;  %s931_s3 = inlined_call_operand.vmem [shape: bf16[128,128], index: 3, kind: input, shape index: {}]   ;;  %s932_s4 = inlined_call_operand.vmem [shape: f32[1,128], index: 4, kind: input, shape index: {}]   ;;  %s933_s5 = inlined_call_operand.vmem [shape: bf16[128,2], index: 5, kind: input, shape index: {}]   ;;  %s934_s6 = inlined_call_operand.vmem [shape: f32[1,2], index: 6, kind: input, shape index: {}]   ;;  %s935_s7 = inlined_call_operand.vmem [shape: f32[64,2], index: 7, kind: output, shape index: {}]  }
   0x1 LB: > { %s670_s25 = sadd.s32 4294967295, %s802_s24   ;;  %p674_p0 = scmp.ge.s32.totalorder %s802_s24, 1  ;;  %s802_s24 = sphi %s844_s24, %s17_s24  }
   0x2   : > { %p238_p1 = scmp.lt.s32.totalorder %s802_s24, 3 }
   0x4   : > { %p239_p2 = pnand %p674_p0, %p238_p1 }
   0x5   : > { %v289_v0 = vld [vmem:[%s929_s1] sm:$0x3] (!%p239_p2)  ;;  %vm304_vm0 = vcmask (!%p239_p2), 1041408   ;;  %s675_s28 = sshll.u32 (!%p239_p2), %s670_s25, 2  ;;  %v781_v3 = vld [vmem:[%s931_s3 + $0x8] sm:$0xff] (!%p239_p2)   ;;  %v782_v4 = vld [vmem:[%s931_s3 + $0x10] sm:$0xff] (!%p239_p2)  }
   0x6   : > { %242 = sbr.rel (%p239_p2) target bundleno = 682 (0x2aa), region = 48  ;;  %v780_v1 = vld [vmem:[%s931_s3] sm:$0xff] (!%p239_p2)   ;;  %771 = vmatprep.subr.msk.bf16.mxu0 (!%p239_p2), %vm304_vm0, %v289_v0  ;;  %v306_v2 = vsel (!%p239_p2), %vm304_vm0, %v289_v0, 0  ;;  %p271_p3 = scmp.lt.s32.totalorder (!%p239_p2), %s675_s28, 7  ;;  %v783_v5 = vld [vmem:[%s931_s3 + $0x18] sm:$0xff] (!%p239_p2)   ;;  %vm297_vm1 = vcmask (!%p239_p2), 31744  }
   0x7   : > { %726 = vmatpush3.bf16.msra.mxu0 (!%p239_p2), %v306_v2  ;;  %731 = vmatprep.subr.bf16.mxu1 (!%p239_p2), %v780_v1  ;;  %v784_v12 = vld [vmem:[%s931_s3 + $0x20] sm:$0xff] (!%p239_p2)   ;;  %v785_v13 = vld [vmem:[%s931_s3 + $0x28] sm:$0xff] (!%p239_p2)   ;;  %v786_v14 = vld [vmem:[%s931_s3 + $0x30] sm:$0xff] (!%p239_p2)   ;;  %vm609_vm2 = vcmask (!%p239_p2), 15360  }
   0x8   : > { %732 = vmatpush3.bf16.msra.mxu1 (!%p239_p2), %v780_v1  ;;  %v787_v15 = vld [vmem:[%s931_s3 + $0x38] sm:$0xff] (!%p239_p2)   ;;  %v788_v16 = vld [vmem:[%s933_s5] sm:$0xff] (!%p239_p2)   ;;  %v789_v17 = vld [vmem:[%s933_s5 + $0x8] sm:$0xff] (!%p239_p2)  }
   0x9   : > { %733 = vmatprep.subr.bf16.mxu1 (!%p239_p2), %v781_v3  ;;  %751 = vmatprep.subr.bf16.mxu0 (!%p239_p2), %v788_v16  ;;  %v790_v18 = vld [vmem:[%s933_s5 + $0x10] sm:$0xff] (!%p239_p2)   ;;  %v791_v19 = vld [vmem:[%s933_s5 + $0x18] sm:$0xff] (!%p239_p2)   ;;  %v792_v20 = vld [vmem:[%s933_s5 + $0x20] sm:$0xff] (!%p239_p2)  }
   0xa   : > { %v793_v21 = vld [vmem:[%s933_s5 + $0x28] sm:$0xff] (!%p239_p2)   ;;  %v679_v22 = vld [vmem:[%s930_s2] ss:$0 sm:$0xff] (!%p239_p2)  ;;  %v794_v37 = vld [vmem:[%s933_s5 + $0x30] sm:$0xff] (!%p239_p2)  }
   0xb   : > { %v795_v38 = vld [vmem:[%s933_s5 + $0x38] sm:$0xff] (!%p239_p2)   ;;  %v682_v39 = vld [vmem:[%s932_s4] ss:$0 sm:$0xff] (!%p239_p2) }
   0xc   : > { %734 = vmatpush3.bf16.msra.mxu1 (!%p239_p2), %v781_v3  ;;  %v691_v54 = vld [vmem:[%s934_s6] ss:$0 sm:$0xff] (!%p239_p2) }
   0xd   : > { %s937_s28 = smov (!%p271_p3, %s675_s28), 7  ;;  %735 = vmatprep.subr.bf16.mxu1 %v782_v4 }
   0xe   : > { %s676_s12 = sshll.u32 %s937_s28, 3 }
   0xf   : > { %s274_s15 = scalar_lea.vmem %s928_s0, %s676_s12  ;;  %s280_s9 = scalar_lea.vmem %s935_s7, %s676_s12 }
  0x10   : > { %v283_v6 = vld [vmem:[%s274_s15] sm:$0xff]  ;;  %v284_v7 = vld [vmem:[%s274_s15 + $0x8] sm:$0xff]  ;;  %v285_v8 = vld [vmem:[%s274_s15 + $0x10] sm:$0xff]  ;;  %736 = vmatpush3.bf16.msra.mxu1 %v782_v4 }
  0x11   : > { %v287_v9 = vpack.c.bf16 %v284_v7, %v283_v6  ;;  %v286_v10 = vld [vmem:[%s274_s15 + $0x18] sm:$0xff]  ;;  %737 = vmatprep.subr.bf16.mxu1 %v783_v5 }
  0x12   : > { %v288_v11 = vpack.c.bf16 %v286_v10, %v285_v8 }
  0x13   : > { %727 = vmatprep.mubr.msk.bf16.mxu0 %vm297_vm1, %v287_v9 }
  0x14   : > { %728 = vmatmul.mubr.msk.bf16.vlgmr.msra.gmra.mrb[0].mxu0 %vm297_vm1, %v288_v11  ;;  %738 = vmatpush3.bf16.msra.mxu1 %v783_v5 }
  0x15   : > { %739 = vmatprep.subr.bf16.mxu1 %v784_v12  ;;  %752 = vmatpush3.bf16.msra.mxu0 %v788_v16 }
  0x16   : > { %753 = vmatprep.subr.bf16.mxu0 %v789_v17 }
  0x18   : > { %740 = vmatpush3.bf16.msra.mxu1 %v784_v12 }
  0x19   : > { %741 = vmatprep.subr.bf16.mxu1 %v785_v13  ;;  %754 = vmatpush3.bf16.msra.mxu0 %v789_v17 }
  0x1a   : > { %755 = vmatprep.subr.bf16.mxu0 %v790_v18 }
  0x1c   : > { %742 = vmatpush3.bf16.msra.mxu1 %v785_v13 }
  0x1d   : > { %743 = vmatprep.subr.bf16.mxu1 %v786_v14  ;;  %756 = vmatpush3.bf16.msra.mxu0 %v790_v18 }
  0x1e   : > { %757 = vmatprep.subr.bf16.mxu0 %v791_v19 }
  0x20   : > { %744 = vmatpush3.bf16.msra.mxu1 %v786_v14 }
  0x21   : > { %745 = vmatprep.subr.bf16.mxu1 %v787_v15  ;;  %758 = vmatpush3.bf16.msra.mxu0 %v791_v19 }
  0x22   : > { %759 = vmatprep.subr.bf16.mxu0 %v792_v20 }
  0x24   : > { %746 = vmatpush3.bf16.msra.mxu1 %v787_v15 }
  0x25   : > { %760 = vmatpush3.bf16.msra.mxu0 %v792_v20 }
  0x26   : > { %761 = vmatprep.subr.bf16.mxu0 %v793_v21 }
  0x29   : > { %762 = vmatpush3.bf16.msra.mxu0 %v793_v21 }
  0x2a   : > { %763 = vmatprep.subr.bf16.mxu0 %v794_v37 }
  0x2d   : > { %764 = vmatpush3.bf16.msra.mxu0 %v794_v37 }
  0x2e   : > { %765 = vmatprep.subr.bf16.mxu0 %v795_v38 }
  0x31   : > { %766 = vmatpush3.bf16.msra.mxu0 %v795_v38 }
  0xe7   : > { %v729_v23 = vpop.f32.mrb[0].mxu0 }
  0xe8   : > { %v351_v24 = vadd.f32 %v729_v23, %v679_v22  ;;  %v342_v25 = vpop.f32.mrb[1].mxu0 }
  0xe9   : > { %v343_v26 = vadd.f32 %v679_v22, %v342_v25  ;;  %v730_v27 = vpop.f32.mrb[2].mxu0 }
  0xea   : > { %v354_v28 = vadd.f32 %v730_v27, %v679_v22  ;;  %v345_v29 = vpop.f32.mrb[3].mxu0  ;;  %v359_v31 = vmax.f32 %v351_v24, 0.0 }
  0xeb   : > { %v346_v30 = vadd.f32 %v679_v22, %v345_v29  ;;  %v357_v33 = vmax.f32 %v343_v26, 0.0 }
  0xec   : > { %v360_v32 = vmax.f32 %v354_v28, 0.0 }
  0xed   : > { %v358_v34 = vmax.f32 %v346_v30, 0.0 }
  0xee   : > { %v362_v35 = vpack.c.bf16 %v360_v32, %v359_v31 }
  0xef   : > { %v361_v36 = vpack.c.bf16 %v358_v34, %v357_v33 }
  0xf1   : > { %747 = vmatprep.mubr.bf16.mxu1 %v361_v36 }
  0xf2   : > { %748 = vmatmul.mubr.bf16.vlgmr.msra.gmra.mrb[0].mxu1 %v362_v35 }
 0x1c5   : > { %v749_v40 = vpop.f32.mrb[0].mxu1 }
 0x1c6   : > { %v477_v41 = vadd.f32 %v749_v40, %v682_v39  ;;  %v468_v42 = vpop.f32.mrb[1].mxu1 }
 0x1c7   : > { %v469_v43 = vadd.f32 %v682_v39, %v468_v42  ;;  %v750_v44 = vpop.f32.mrb[2].mxu1 }
 0x1c8   : > { %v480_v45 = vadd.f32 %v750_v44, %v682_v39  ;;  %v471_v46 = vpop.f32.mrb[3].mxu1  ;;  %v485_v48 = vmax.f32 %v477_v41, 0.0 }
 0x1c9   : > { %v472_v47 = vadd.f32 %v682_v39, %v471_v46  ;;  %v483_v50 = vmax.f32 %v469_v43, 0.0 }
 0x1ca   : > { %v486_v49 = vmax.f32 %v480_v45, 0.0 }
 0x1cb   : > { %v484_v51 = vmax.f32 %v472_v47, 0.0 }
 0x1cc   : > { %v488_v52 = vpack.c.bf16 %v486_v49, %v485_v48 }
 0x1cd   : > { %v487_v53 = vpack.c.bf16 %v484_v51, %v483_v50 }
 0x1cf   : > { %767 = vmatprep.mubr.bf16.mxu0 %v487_v53 }
 0x1d0   : > { %768 = vmatmul.mubr.bf16.vlgmr.msra.gmra.mrb[4].mxu0 %v488_v52 }
 0x2a3   : > { %v769_v55 = vpop.f32.mrb[4].mxu0 }
 0x2a4   : > { %v594_v56 = vpop.f32.mrb[5].mxu0  ;;  %v603_v61 = vadd.f32 %v769_v55, %v691_v54 }
 0x2a5   : > { %v595_v57 = vadd.f32 %v691_v54, %v594_v56  ;;  %v770_v58 = vpop.f32.mrb[6].mxu0 }
 0x2a6   : > { %v597_v59 = vpop.f32.mrb[7].mxu0  ;;  %v606_v62 = vadd.f32 %v770_v58, %v691_v54  ;;  %612 = vst.msk [vmem:[%s280_s9 + $0x10] sm:$0xff] %vm609_vm2, %v603_v61 }
 0x2a7   : > { %610 = vst.msk [vmem:[%s280_s9] sm:$0xff] %vm609_vm2, %v595_v57  ;;  %v598_v60 = vadd.f32 %v691_v54, %v597_v59 }
 0x2a8   : > { %613 = vst.msk [vmem:[%s280_s9 + $0x18] sm:$0xff] %vm609_vm2, %v606_v62 }
 0x2a9   : > { %611 = vst.msk [vmem:[%s280_s9 + $0x8] sm:$0xff] %vm609_vm2, %v598_v60 }
 0x2aa PF: > { %s17_s24 = sadd.s32 1, %s802_s24  }
 0x2ab   : > { %p14_p4 = scmp.ge.s32.totalorder %s17_s24, 4  }
 0x2ad   :  { %16 = sbr.rel (!%p14_p4) target bundleno = 1 (0x1), region = 78 }

</bundles_post_ra>
